<compile_context>
chip_gen: v6e
topology: v6e:2x2x1
jax: 0.10.0
libtpu: 0.0.40
codegen_flags: <defaults>
</compile_context>

<pallas_src>
import functools

import jax
import jax.numpy as jnp
from jax.experimental import pallas as pl
from jax.experimental.pallas import tpu as pltpu


def _round_up(x, m):
    return ((x + m - 1) // m) * m


def _contrastive_loss_kernel(o1_ref, o2_ref, lbl_ref, out_ref, acc_ref, *,
                             margin, eps, batch, block_rows, tiles_per_split):
    c = pl.program_id(0)          # "parallel" split axis (megacore split on v7x)
    t = pl.program_id(1)          # "arbitrary" tile axis within the split

    @pl.when(t == 0)
    def _init():
        acc_ref[...] = jnp.zeros_like(acc_ref)

    o1 = o1_ref[...].astype(jnp.float32)           # (TB, D)
    o2 = o2_ref[...].astype(jnp.float32)           # (TB, D)
    lbl = lbl_ref[...].astype(jnp.float32)         # (TB, 1)

    # F.pairwise_distance adds eps to the elementwise difference before the norm.
    diff = o1 - o2 + eps
    d2 = jnp.sum(diff * diff, axis=-1, keepdims=True)        # (TB, 1)
    d = jnp.sqrt(d2)
    hinge = jnp.maximum(margin - d, 0.0)
    # Reuse d2 directly for the similar-pair term (== pow(d, 2)).
    per_sample = (1.0 - lbl) * d2 + lbl * (hinge * hinge)    # (TB, 1)

    # Mask rows past the true batch size (tail tile / empty tile of this split).
    row = jax.lax.broadcasted_iota(jnp.int32, per_sample.shape, 0)
    global_row = (c * tiles_per_split + t) * block_rows + row
    per_sample = jnp.where(global_row < batch, per_sample, 0.0)

    acc_ref[...] += jnp.sum(per_sample, axis=0, keepdims=True)   # (1, 1)

    @pl.when(t == pl.num_programs(1) - 1)
    def _finalize():
        # Divide by the *global* batch size (not the tile size); the wrapper
        # sums the per-split partials.
        out_ref[0] = acc_ref[...] * (1.0 / batch)


def contrastive_loss(output1, output2, label, margin=2.0, eps=1e-6,
                     block_rows=None):
    """output1, output2: (B, D) float (f32 or bf16); label: (B, 1) in {0,1}.

    Returns the scalar contrastive loss (f32)."""
    assert output1.shape == output2.shape and output1.ndim == 2
    B, D = output1.shape
    if label.shape == (B,):
        label = label.reshape(B, 1)
    assert label.shape == (B, 1)

    itemsize = jnp.dtype(output1.dtype).itemsize

    # Batch tile: as large as possible while keeping the double-buffered (x2)
    # footprint of both inputs (x2) around <= 8 MiB -> fits every generation.
    if block_rows is None:
        rows = (8 * 1024 * 1024) // (4 * max(D, 1) * itemsize)
        block_rows = max(8, min(1024, (rows // 8) * 8))
    block_rows = max(8, (int(block_rows) // 8) * 8)
    block_rows = min(block_rows, _round_up(B, 8))

    num_tiles = pl.cdiv(B, block_rows)
    # Leading "parallel" axis: lets v7x's 2 TensorCores split the batch;
    # on v5e/v6e (1 TC) it is just a tiny outer loop.
    n_split = 2 if num_tiles >= 2 else 1
    tiles_per_split = pl.cdiv(num_tiles, n_split)

    def in_map(c, t):
        # Clamp so a trailing empty tile slot re-reads a real in-bounds block;
        # its rows are masked out inside the kernel anyway.
        return (jnp.minimum(c * tiles_per_split + t, num_tiles - 1), 0)

    kernel = functools.partial(
        _contrastive_loss_kernel,
        margin=float(margin), eps=float(eps), batch=B,
        block_rows=block_rows, tiles_per_split=tiles_per_split)

    cost = pl.CostEstimate(
        flops=6 * B * D + 10 * B,
        transcendentals=B,  # sqrt per row
        bytes_accessed=2 * B * D * itemsize
        + B * jnp.dtype(label.dtype).itemsize + 4 * n_split,
    )

    partials = pl.pallas_call(
        kernel,
        out_shape=jax.ShapeDtypeStruct((n_split, 1, 1), jnp.float32),
        grid=(n_split, tiles_per_split),
        in_specs=[
            pl.BlockSpec((block_rows, D), in_map),
            pl.BlockSpec((block_rows, D), in_map),
            pl.BlockSpec((block_rows, 1), in_map),
        ],
        out_specs=pl.BlockSpec((1, 1, 1), lambda c, t: (c, 0, 0)),
        scratch_shapes=[pltpu.VMEM((1, 1), jnp.float32)],
        compiler_params=pltpu.CompilerParams(
            dimension_semantics=("parallel", "arbitrary")),
        cost_estimate=cost,
    )(output1, output2, label)

    # Tiny finishing add of the (<=2) per-core partials.
    return jnp.sum(partials)


def _reference(o1, o2, lbl, margin, eps):
    diff = o1.astype(jnp.float32) - o2.astype(jnp.float32) + eps
    d = jnp.sqrt(jnp.sum(diff * diff, axis=-1, keepdims=True))
    return jnp.mean((1.0 - lbl) * d ** 2
                    + lbl * jnp.maximum(margin - d, 0.0) ** 2)


if __name__ == "__main__":
    key = jax.random.PRNGKey(0)
    k1, k2, k3, k4, k5, k6 = jax.random.split(key, 6)

    # Small Siamese-embedding-style shapes.
    B, D = 8, 32
    o1 = jax.random.normal(k1, (B, D), dtype=jnp.float32)
    o2 = jax.random.normal(k2, (B, D), dtype=jnp.float32)
    lbl = jax.random.bernoulli(k3, 0.5, (B, 1)).astype(jnp.float32)

    loss = jax.block_until_ready(contrastive_loss(o1, o2, lbl, margin=2.0))
    ref = _reference(o1, o2, lbl, 2.0, 1e-6)
    assert jnp.allclose(loss, ref, rtol=1e-5, atol=1e-5), (loss, ref)

    # Exercise the tiled + masked + split path: B not a multiple of the tile.
    B2, D2 = 20, 32
    o1b = jax.random.normal(k4, (B2, D2), dtype=jnp.float32)
    o2b = jax.random.normal(k5, (B2, D2), dtype=jnp.float32)
    lblb = jax.random.bernoulli(k6, 0.5, (B2, 1)).astype(jnp.float32)

    loss2 = jax.block_until_ready(
        contrastive_loss(o1b, o2b, lblb, margin=1.5, block_rows=8))
    ref2 = _reference(o1b, o2b, lblb, 1.5, 1e-6)
    assert jnp.allclose(loss2, ref2, rtol=1e-5, atol=1e-5), (loss2, ref2)

    print("KERNEL_OK")
</pallas_src>

<mosaic_0001>
module attributes {stable_mosaic.version = 11 : i64} {
  func.func @_contrastive_loss_kernel(%arg0: i32, %arg1: i32, %arg2: memref<8x32xf32, #tpu.memory_space<vmem>>, %arg3: memref<8x32xf32, #tpu.memory_space<vmem>>, %arg4: memref<8x1xf32, #tpu.memory_space<vmem>>, %arg5: memref<1x1x1xf32, #tpu.memory_space<vmem>>, %arg6: memref<1x1xf32, #tpu.memory_space<vmem>>) attributes {dimension_semantics = [#tpu.dimension_semantics<parallel>, #tpu.dimension_semantics<arbitrary>], iteration_bounds = array<i64: 1, 1>, scalar_prefetch = 0 : i64, scratch_operands = 1 : i64, tpu.core_type = #tpu.core_type<tc>, window_params = [{transform_indices = @transform_0, window_bounds = array<i64: 8, 32>}, {transform_indices = @transform_1, window_bounds = array<i64: 8, 32>}, {transform_indices = @transform_2, window_bounds = array<i64: 8, 1>}, {transform_indices = @transform_3, window_bounds = array<i64: 1, 1, 1>}]} {
    %c0_i32 = arith.constant 0 : i32
    %0 = arith.cmpi eq, %arg1, %c0_i32 : i32
    %1 = arith.extui %0 : i1 to i32
    %c0_i32_0 = arith.constant 0 : i32
    %2 = arith.cmpi ne, %1, %c0_i32_0 : i32
    scf.if %2 {
      %cst_19 = arith.constant 0.000000e+00 : f32
      %41 = vector.broadcast %cst_19 : f32 to vector<1x1xf32>
      %c0_20 = arith.constant 0 : index
      %c0_21 = arith.constant 0 : index
      %42 = vector.load %arg6[%c0_20, %c0_21] : memref<1x1xf32, #tpu.memory_space<vmem>>, vector<1x1xf32>
      tpu.vector_store %arg6[%c0_20, %c0_21], %41 {strides = array<i32>} : memref<1x1xf32, #tpu.memory_space<vmem>>, vector<1x1xf32>,
    } else {
    }
    %c0 = arith.constant 0 : index
    %c0_1 = arith.constant 0 : index
    %3 = vector.load %arg2[%c0, %c0_1] : memref<8x32xf32, #tpu.memory_space<vmem>>, vector<8x32xf32>
    %c0_2 = arith.constant 0 : index
    %c0_3 = arith.constant 0 : index
    %4 = vector.load %arg3[%c0_2, %c0_3] : memref<8x32xf32, #tpu.memory_space<vmem>>, vector<8x32xf32>
    %c0_4 = arith.constant 0 : index
    %c0_5 = arith.constant 0 : index
    %5 = vector.load %arg4[%c0_4, %c0_5] : memref<8x1xf32, #tpu.memory_space<vmem>>, vector<8x1xf32>
    %6 = arith.subf %3, %4 : vector<8x32xf32>
    %cst = arith.constant 9.99999997E-7 : f32
    %7 = vector.broadcast %cst : f32 to vector<8x32xf32>
    %8 = arith.addf %6, %7 : vector<8x32xf32>
    %9 = arith.mulf %8, %8 : vector<8x32xf32>
    %cst_6 = arith.constant dense<0.000000e+00> : vector<8xf32>
    %10 = vector.multi_reduction <add>, %9, %cst_6 [1] : vector<8x32xf32> to vector<8xf32>
    %11 = vector.shape_cast %10 : vector<8xf32> to vector<8x1xf32>
    %12 = math.sqrt %11 : vector<8x1xf32>
    %cst_7 = arith.constant 2.000000e+00 : f32
    %13 = vector.broadcast %cst_7 : f32 to vector<8x1xf32>
    %14 = arith.subf %13, %12 : vector<8x1xf32>
    %cst_8 = arith.constant 0.000000e+00 : f32
    %15 = vector.broadcast %cst_8 : f32 to vector<8x1xf32>
    %16 = arith.maximumf %14, %15 : vector<8x1xf32>
    %cst_9 = arith.constant 1.000000e+00 : f32
    %17 = vector.broadcast %cst_9 : f32 to vector<8x1xf32>
    %18 = arith.subf %17, %5 : vector<8x1xf32>
    %19 = arith.mulf %18, %11 : vector<8x1xf32>
    %20 = arith.mulf %16, %16 : vector<8x1xf32>
    %21 = arith.mulf %5, %20 : vector<8x1xf32>
    %22 = arith.addf %19, %21 : vector<8x1xf32>
    %23 = tpu.iota {dimensions = array<i32: 0>} : vector<8x1xi32>
    %c1_i32 = arith.constant 1 : i32
    %24 = arith.muli %arg0, %c1_i32 : i32
    %25 = arith.addi %24, %arg1 : i32
    %c8_i32 = arith.constant 8 : i32
    %26 = arith.muli %25, %c8_i32 : i32
    %27 = vector.broadcast %26 : i32 to vector<8x1xi32>
    %28 = arith.addi %27, %23 : vector<8x1xi32>
    %c8_i32_10 = arith.constant 8 : i32
    %29 = vector.broadcast %c8_i32_10 : i32 to vector<8x1xi32>
    %30 = arith.cmpi slt, %28, %29 : vector<8x1xi32>
    %cst_11 = arith.constant 0.000000e+00 : f32
    %31 = vector.broadcast %cst_11 : f32 to vector<8x1xf32>
    %32 = arith.select %30, %22, %31 : vector<8x1xi1>, vector<8x1xf32>
    %c0_12 = arith.constant 0 : index
    %c0_13 = arith.constant 0 : index
    %33 = vector.load %arg6[%c0_12, %c0_13] : memref<1x1xf32, #tpu.memory_space<vmem>>, vector<1x1xf32>
    %cst_14 = arith.constant dense<0.000000e+00> : vector<1xf32>
    %34 = vector.multi_reduction <add>, %32, %cst_14 [0] : vector<8x1xf32> to vector<1xf32>
    %35 = vector.shape_cast %34 : vector<1xf32> to vector<1x1xf32>
    %36 = arith.addf %33, %35 : vector<1x1xf32>
    %c0_15 = arith.constant 0 : index
    %c0_16 = arith.constant 0 : index
    %37 = vector.load %arg6[%c0_15, %c0_16] : memref<1x1xf32, #tpu.memory_space<vmem>>, vector<1x1xf32>
    tpu.vector_store %arg6[%c0_15, %c0_16], %36 {strides = array<i32>} : memref<1x1xf32, #tpu.memory_space<vmem>>, vector<1x1xf32>,
    %c0_i32_17 = arith.constant 0 : i32
    %38 = arith.cmpi eq, %arg1, %c0_i32_17 : i32
    %39 = arith.extui %38 : i1 to i32
    %c0_i32_18 = arith.constant 0 : i32
    %40 = arith.cmpi ne, %39, %c0_i32_18 : i32
    scf.if %40 {
      %c0_19 = arith.constant 0 : index
      %c0_20 = arith.constant 0 : index
      %41 = vector.load %arg6[%c0_19, %c0_20] : memref<1x1xf32, #tpu.memory_space<vmem>>, vector<1x1xf32>
      %cst_21 = arith.constant 1.250000e-01 : f32
      %42 = vector.broadcast %cst_21 : f32 to vector<1x1xf32>
      %43 = arith.mulf %41, %42 : vector<1x1xf32>
      %c0_22 = arith.constant 0 : index
      %c0_23 = arith.constant 0 : index
      %c0_24 = arith.constant 0 : index
      %44 = vector.load %arg5[%c0_22, %c0_23, %c0_24] : memref<1x1x1xf32, #tpu.memory_space<vmem>>, vector<1x1x1xf32>
      %45 = vector.shape_cast %44 : vector<1x1x1xf32> to vector<1x1xf32>
      %46 = vector.shape_cast %43 : vector<1x1xf32> to vector<1x1x1xf32>
      tpu.vector_store %arg5[%c0_22, %c0_23, %c0_24], %46 {strides = array<i32>} : memref<1x1x1xf32, #tpu.memory_space<vmem>>, vector<1x1x1xf32>,
    } else {
    }
    return
  }
  func.func @transform_0(%arg0: i32, %arg1: i32) -> (i32, i32) {
    %c1_i32 = arith.constant 1 : i32
    %0 = arith.muli %arg0, %c1_i32 : i32
    %1 = arith.addi %0, %arg1 : i32
    %c0_i32 = arith.constant 0 : i32
    %2 = arith.minsi %1, %c0_i32 : i32
    %c0_i32_0 = arith.constant 0 : i32
    %c0_i32_1 = arith.constant 0 : i32
    return %2, %c0_i32_0 : i32, i32
  }
  func.func @transform_1(%arg0: i32, %arg1: i32) -> (i32, i32) {
    %c1_i32 = arith.constant 1 : i32
    %0 = arith.muli %arg0, %c1_i32 : i32
    %1 = arith.addi %0, %arg1 : i32
    %c0_i32 = arith.constant 0 : i32
    %2 = arith.minsi %1, %c0_i32 : i32
    %c0_i32_0 = arith.constant 0 : i32
    %c0_i32_1 = arith.constant 0 : i32
    return %2, %c0_i32_0 : i32, i32
  }
  func.func @transform_2(%arg0: i32, %arg1: i32) -> (i32, i32) {
    %c1_i32 = arith.constant 1 : i32
    %0 = arith.muli %arg0, %c1_i32 : i32
    %1 = arith.addi %0, %arg1 : i32
    %c0_i32 = arith.constant 0 : i32
    %2 = arith.minsi %1, %c0_i32 : i32
    %c0_i32_0 = arith.constant 0 : i32
    %c0_i32_1 = arith.constant 0 : i32
    return %2, %c0_i32_0 : i32, i32
  }
  func.func @transform_3(%arg0: i32, %arg1: i32) -> (i32, i32, i32) {
    %c0_i32 = arith.constant 0 : i32
    %c0_i32_0 = arith.constant 0 : i32
    %c0_i32_1 = arith.constant 0 : i32
    return %arg0, %c0_i32, %c0_i32_0 : i32, i32, i32
  }
}

</mosaic_0001>

<bundles_post_ra>
// kernel: tpu_custom_call.1
= control target key start
LH: loop header
LB: loop body
LE: loop exit
PB: predicated region body
PF: predicated region fallthrough
CT: control target
= control target key end

     0   :  { %8 = vsyncpa [#allocation4], 0  ;;  %s261_s0 = inlined_call_operand.vmem [shape: f32[8,32], index: 0, kind: input, shape index: {}]   ;;  %s262_s1 = inlined_call_operand.hbm [shape: f32[8,32], index: 1, kind: input, shape index: {}]   ;;  %s263_s2 = inlined_call_operand.vmem [shape: f32[8,1], index: 2, kind: input, shape index: {}]   ;;  %s264_s3 = inlined_call_operand.hbm [shape: f32[1,1,1], index: 3, kind: output, shape index: {}]  }
   0x1   :  { %9 = vsyncpa [#allocation5], 0  ;;  %s223_s12 = smov [#allocation3]  }
   0x2   :  { %s33_s13 = sshll.u32 %s223_s12, 4  ;;  %s34_s13 = int_to_ptr.vmem [resolvable:$true] %s33_s13 }
   0x3   :  { %s187_s14 = scalar_lea.vmem %s34_s13, 128  ;;  %p192_p1 = scmp.lt.s32.totalorder %s34_s13, %s34_s13 }
   0x4   :  { %p188_p0 = scmp.ne.s32.totalorder %s34_s13, %s187_s14  ;;  %p193_p2 = scmp.lt.s32.totalorder %s187_s14, %s187_s14 }
   0x6   :  { %p194_p3 = por %p193_p2, %p192_p1 }
   0x8   :  { %p195_p4 = pnand %p194_p3, %p188_p0 }
   0xa   :  { %198 = shalt.err (!%p195_p4)
}
   0xb   :  { %36 = dma.hbm_to_vmem [thread:$0]  %s262_s1, 128, %s34_s13, [#allocation4]  }
   0xc   :  { %219 = dma.done.wait [#allocation4], 128  }
   0xd   :  { %220 = vsyncadd [#allocation4], 4294967168  ;;  %v95_v0 = vld [vmem:[%s261_s0] sm:$0xff]  ;;  %vm101_vm0 = vcmask 261120   ;;  %vm93_vm1 = vcmask 0   ;;  %v224_v6 = vmov 0.0  }
   0xe   :  { %v96_v1 = vld [vmem:[#allocation3] sm:$0xff]  ;;  %94 = vst.msk [vmem:[#allocation2] sm:$0x1] %vm93_vm1, %v224_v6  ;;  %vm128_vm4 = vcmask 7168  }
   0xf   :  { %v98_v2 = vsub.f32 %v95_v0, %v96_v1  ;;  %v97_v12 = vld [vmem:[%s263_s2] sm:$0xff]  ;;  %s225_s2 = smov [#allocation6]  }
  0x10   :  { %v114_v16 = vsub.f32 1.0, %v97_v12  ;;  %s151_s19 = sshll.u32 %s225_s2, 4  ;;  %s152_s19 = int_to_ptr.vmem [resolvable:$true] %s151_s19 }
  0x11   :  { %v99_v3 = vadd.f32 1e-06, %v98_v2  ;;  %s199_s20 = scalar_lea.vmem %s152_s19, 16  ;;  %s203_s21 = scalar_lea.vmem %s152_s19, 32 }
  0x12   :  { %p200_p5 = scmp.ne.s32.totalorder %s152_s19, %s199_s20  ;;  %p204_p6 = scmp.lt.s32.totalorder %s152_s19, %s152_s19 }
  0x13   :  { %v100_v4 = vmul.f32 %v99_v3, %v99_v3  ;;  %p205_p7 = scmp.lt.s32.totalorder %s203_s21, %s199_s20 }
  0x15   :  { %v102_v5 = vsel %vm101_vm0, %v100_v4, 0.0  ;;  %v127_v27 = vld [vmem:[#allocation2] sm:$0x1]  ;;  %p206_p8 = por %p205_p7, %p204_p6 }
  0x16   :  { %103 = vadd.xlane.f32.xlu0 %v102_v5 }
  0x17   :  { %p207_p9 = pnand %p206_p8, %p200_p5 }
  0x9f   :  { %v104_v7 = vpop.xlane.xlu0 %103 }
  0xa0   :  { %177 = vrsqrt.f32 %v104_v7  ;;  %vm107_vm2 = vcmp.eq.f32.partialorder %v104_v7, inf  ;;  %v110_v10 = vand.u32 2147483648, %v104_v7  ;;  %vm109_vm3 = vcmp.eq.f32.partialorder %v104_v7, 0.0 }
  0xa1   :  { %v115_v18 = vmul.f32 %v114_v16, %v104_v7 }
  0xad   :  { %v178_v8 = vpop.eup %177 }
  0xae   :  { %v106_v9 = vmul.f32 %v178_v8, %v104_v7 }
  0xb0   :  { %v108_v11 = vsel %vm107_vm2, %v104_v7, %v106_v9 }
  0xb1   :  { %v111_v13 = vsel %vm109_vm3, %v110_v10, %v108_v11 }
  0xb2   :  { %v112_v14 = vsub.f32 2.0, %v111_v13 }
  0xb4   :  { %v113_v15 = vmax.f32 %v112_v14, 0.0 }
  0xb6   :  { %v116_v17 = vmul.f32 %v113_v15, %v113_v15 }
  0xb8   :  { %v117_v19 = vmul.f32 %v116_v17, %v97_v12 }
  0xba   :  { %v118_v20 = vadd.f32 %v117_v19, %v115_v18 }
  0xbc   :  { %v129_v21 = vsel %vm128_vm4, %v118_v20, 0.0 }
  0xbd   :  { %v130_v22 = vrot.slane %v129_v21, 4 }
  0xbf   :  { %v131_v23 = vadd.f32 %v130_v22, %v129_v21 }
  0xc1   :  { %v132_v24 = vrot.slane %v131_v23, 2 }
  0xc3   :  { %v133_v25 = vadd.f32 %v132_v24, %v131_v23 }
  0xc5   :  { %v134_v26 = vrot.slane %v133_v25, 1 }
  0xc7   :  { %v135_v28 = vadd.f32 %v134_v26, %v133_v25 }
  0xc9   :  { %v136_v29 = vadd.f32 %v135_v28, %v127_v27 }
  0xcb   :  { %138 = vst.msk [vmem:[#allocation2] sm:$0x1] %vm93_vm1, %v136_v29 }
  0xd2   :  { %v142_v30 = vld [vmem:[#allocation2] sm:$0x1] }
  0xd3   :  { %v143_v31 = vmul.f32 0.125, %v142_v30 }
  0xd5   :  { %144 = vst.msk [vmem:[#allocation6] sm:$0x1] %vm93_vm1, %v143_v31 }
  0xd6   :  { %210 = shalt.err (!%p207_p9)
}
  0xd7   :  { %154 = dma.vmem_to_hbm [thread:$0]  %s152_s19, 16, %s264_s3, [#allocation5]  }
  0xd8   :  { %221 = dma.done.wait [#allocation5], 16  }
  0xd9   :  { %222 = vsyncadd [#allocation5], 4294967280 }
  0xda   :  { %158 = vsyncpa [#allocation4], 1 }
  0xdb   :  { %159 = vsyncpa [#allocation5], 1 }

</bundles_post_ra>
